<compile_context>
chip_gen: v5e
topology: v5e:2x2
jax: 0.10.0
libtpu: 0.0.40
codegen_flags: <defaults>
</compile_context>

<pallas_src>
import functools

import jax
import jax.numpy as jnp
import numpy as np
from jax.experimental import pallas as pl
from jax.experimental.pallas import tpu as pltpu

LANE = 128          # vreg lane width: output-channel dim padded to this
SUBLANE = 16        # bf16 sublane packing: keep M tiles multiples of 16


def _round_up(x, m):
    return ((x + m - 1) // m) * m


# ----------------------------------------------------------------------------
# Pallas kernel: fused (im2col-GEMM + bias + optional LeakyReLU(0.2))
# ----------------------------------------------------------------------------
def _mm_bias_act_kernel(x_ref, w_ref, b_ref, o_ref, *, apply_act):
    # x_ref: (TM, K) bf16   w_ref: (K, 128) bf16   b_ref: (1, 128) f32
    # o_ref: (TM, 128) f32
    acc = jnp.dot(x_ref[...], w_ref[...], preferred_element_type=jnp.float32)
    acc = acc + b_ref[...]                       # broadcast bias over rows
    if apply_act:                                # LeakyReLU(0.2)
        acc = jnp.where(acc >= 0, acc, 0.2 * acc)
    o_ref[...] = acc.astype(o_ref.dtype)


def _choose_m_tiling(m):
    """Return (padded_m, tile_m).

    Prefer tiles that divide M exactly (no row-padding pass) and give >= 2
    grid steps (so v7x's second TensorCore is used); for awkward large M,
    accept some padding in exchange for big (memory-friendly) tiles.
    """
    m16 = _round_up(m, SUBLANE)
    tm = SUBLANE
    for t in (512, 256, 128, 64, 32, 16):
        if m16 % t == 0 and m16 // t >= 2:
            tm = t
            break
    if tm < 128 and m16 >= 1024:
        tm = 512
        m16 = _round_up(m16, tm)
    return m16, tm


def fused_conv_gemm(x2d, w2d, bias, apply_act):
    """x2d: (M, K) im2col patches, w2d: (K, Cout), bias: (Cout,)."""
    M, K = x2d.shape
    _, cout = w2d.shape

    m_pad, tm = _choose_m_tiling(M)

    # bf16 streamed operands; padded rows only when M isn't a tile multiple.
    x2d = x2d.astype(jnp.bfloat16)
    if m_pad != M:
        x2d = jnp.pad(x2d, ((0, m_pad - M), (0, 0)))

    # Lane-dense weights / bias: zero-pad Cout -> 128 (free MXU lanes, full
    # unmasked stores).  Extra lanes sliced off after the call.
    w_p = jnp.zeros((K, LANE), jnp.bfloat16).at[:, :cout].set(
        w2d.astype(jnp.bfloat16))
    b_p = jnp.zeros((1, LANE), jnp.float32).at[:, :cout].set(
        bias.reshape(1, cout).astype(jnp.float32))

    out = pl.pallas_call(
        functools.partial(_mm_bias_act_kernel, apply_act=apply_act),
        out_shape=jax.ShapeDtypeStruct((m_pad, LANE), jnp.float32),
        grid=(m_pad // tm,),
        in_specs=[
            pl.BlockSpec((tm, K), lambda i: (i, 0)),     # streamed patch rows
            pl.BlockSpec((K, LANE), lambda i: (0, 0)),   # resident weights
            pl.BlockSpec((1, LANE), lambda i: (0, 0)),   # resident bias
        ],
        out_specs=pl.BlockSpec((tm, LANE), lambda i: (i, 0)),
        compiler_params=pltpu.CompilerParams(
            dimension_semantics=("parallel",)),
    )(x2d, w_p, b_p)
    return out[:M, :cout]


# ----------------------------------------------------------------------------
# Plain-JAX glue: im2col patch extraction (NHWC)
# ----------------------------------------------------------------------------
def im2col(x_nhwc, k, stride, pad):
    x = jnp.pad(x_nhwc, ((0, 0), (pad, pad), (pad, pad), (0, 0)))
    n, hp, wp, c = x.shape
    ho = (hp - k) // stride + 1
    wo = (wp - k) // stride + 1
    cols = []
    for dh in range(k):
        for dw in range(k):
            cols.append(x[:, dh:dh + stride * ho:stride,
                            dw:dw + stride * wo:stride, :])
    patches = jnp.concatenate(cols, axis=-1)            # (N, Ho, Wo, k*k*C)
    return patches.reshape(n * ho * wo, k * k * c), (n, ho, wo)


# ----------------------------------------------------------------------------
# PatchD forward
# ----------------------------------------------------------------------------
def init_patchd_params(key, ndf=8, in_ch=6):
    """Weights in PyTorch layout (Cout, Cin, kh, kw) + bias (Cout,)."""
    dims = [(in_ch, ndf), (ndf, ndf * 2), (ndf * 2, ndf * 4),
            (ndf * 4, ndf * 8), (ndf * 8, 1)]
    params = []
    for cin, cout in dims:
        key, kw_, kb_ = jax.random.split(key, 3)
        w = 0.05 * jax.random.normal(kw_, (cout, cin, 4, 4), jnp.float32)
        b = 0.05 * jax.random.normal(kb_, (cout,), jnp.float32)
        params.append((w, b))
    return params


def patchd_forward(x_nchw, params):
    strides = [2, 2, 2, 1, 1]
    x = jnp.transpose(x_nchw, (0, 2, 3, 1))              # NCHW -> NHWC
    for li, (w, b) in enumerate(params):
        cols, (n, ho, wo) = im2col(x, 4, strides[li], 1)
        # (Cout, Cin, kh, kw) -> (kh, kw, Cin, Cout) -> (kh*kw*Cin, Cout)
        w2d = jnp.transpose(w, (2, 3, 1, 0)).reshape(-1, w.shape[0])
        out2d = fused_conv_gemm(cols, w2d, b, apply_act=(li < 4))
        x = out2d.reshape(n, ho, wo, -1)
    return jnp.transpose(x, (0, 3, 1, 2))                # NHWC -> NCHW


# ----------------------------------------------------------------------------
# Pure-JAX reference.  Mirrors the kernel's numerics: bf16-quantized operands
# into each conv, f32 (HIGHEST) accumulation, f32 bias / LeakyReLU.
# ----------------------------------------------------------------------------
def patchd_reference(x_nchw, params):
    strides = [2, 2, 2, 1, 1]
    x = x_nchw
    for li, (w, b) in enumerate(params):
        xq = x.astype(jnp.bfloat16).astype(jnp.float32)
        wq = w.astype(jnp.bfloat16).astype(jnp.float32)
        x = jax.lax.conv_general_dilated(
            xq, wq, window_strides=(strides[li], strides[li]),
            padding=((1, 1), (1, 1)),
            dimension_numbers=("NCHW", "OIHW", "NCHW"),
            precision=jax.lax.Precision.HIGHEST)
        x = x + b.reshape(1, -1, 1, 1)
        if li < 4:
            x = jnp.where(x >= 0, x, 0.2 * x)
    return x


if __name__ == "__main__":
    key = jax.random.PRNGKey(0)
    k_in, k_par = jax.random.split(key)

    # Small but valid shapes: 6 input channels (concat pair of RGB images),
    # 32x32 spatial so the 5-layer stack produces a 2x2 patch map.
    batch, in_ch, hw = 2, 6, 32
    ndf = 8
    x = jax.random.normal(k_in, (batch, in_ch, hw, hw), jnp.float32)
    params = init_patchd_params(k_par, ndf=ndf, in_ch=in_ch)

    out = jax.block_until_ready(patchd_forward(x, params))
    ref = jax.block_until_ready(patchd_reference(x, params))

    assert out.shape == ref.shape == (batch, 1, 2, 2), out.shape
    np.testing.assert_allclose(np.asarray(out), np.asarray(ref),
                               rtol=1e-3, atol=1e-3)
    print("KERNEL_OK")
</pallas_src>

<mosaic_0001>
module attributes {stable_mosaic.version = 11 : i64} {
  func.func @_mm_bias_act_kernel(%arg0: i32, %arg1: memref<256x96xbf16, #tpu.memory_space<vmem>>, %arg2: memref<96x128xbf16, #tpu.memory_space<vmem>>, %arg3: memref<1x128xf32, #tpu.memory_space<vmem>>, %arg4: memref<256x128xf32, #tpu.memory_space<vmem>>) attributes {dimension_semantics = [#tpu.dimension_semantics<parallel>], iteration_bounds = array<i64: 2>, scalar_prefetch = 0 : i64, scratch_operands = 0 : i64, tpu.core_type = #tpu.core_type<tc>, window_params = [{transform_indices = @transform_0, window_bounds = array<i64: 256, 96>}, {pipeline_mode = #tpu.pipeline_mode<synchronous>, transform_indices = @transform_1, window_bounds = array<i64: 96, 128>}, {pipeline_mode = #tpu.pipeline_mode<synchronous>, transform_indices = @transform_2, window_bounds = array<i64: 1, 128>}, {transform_indices = @transform_3, window_bounds = array<i64: 256, 128>}]} {
    %c0 = arith.constant 0 : index
    %c0_0 = arith.constant 0 : index
    %0 = vector.load %arg1[%c0, %c0_0] : memref<256x96xbf16, #tpu.memory_space<vmem>>, vector<256x96xbf16>
    %c0_1 = arith.constant 0 : index
    %c0_2 = arith.constant 0 : index
    %1 = vector.load %arg2[%c0_1, %c0_2] : memref<96x128xbf16, #tpu.memory_space<vmem>>, vector<96x128xbf16>
    %cst = arith.constant dense<0.000000e+00> : vector<256x128xf32>
    %2 = tpu.matmul %0, %1, %cst {dimension_numbers = #tpu.dot_dimension_numbers<[1], [0], [0], [1], [0, 0, 1, 1], [], []>} : vector<256x96xbf16>, vector<96x128xbf16>, vector<256x128xf32> -> vector<256x128xf32>
    %c0_3 = arith.constant 0 : index
    %c0_4 = arith.constant 0 : index
    %3 = vector.load %arg3[%c0_3, %c0_4] : memref<1x128xf32, #tpu.memory_space<vmem>>, vector<1x128xf32>
    %4 = vector.broadcast %3 : vector<1x128xf32> to vector<256x128xf32>
    %5 = arith.addf %2, %4 : vector<256x128xf32>
    %cst_5 = arith.constant 0.000000e+00 : f32
    %6 = vector.broadcast %cst_5 : f32 to vector<256x128xf32>
    %7 = arith.cmpf oge, %5, %6 : vector<256x128xf32>
    %cst_6 = arith.constant 2.000000e-01 : f32
    %8 = vector.broadcast %cst_6 : f32 to vector<256x128xf32>
    %9 = arith.mulf %8, %5 : vector<256x128xf32>
    %10 = arith.select %7, %5, %9 : vector<256x128xi1>, vector<256x128xf32>
    %c0_7 = arith.constant 0 : index
    %c0_8 = arith.constant 0 : index
    %11 = vector.load %arg4[%c0_7, %c0_8] : memref<256x128xf32, #tpu.memory_space<vmem>>, vector<256x128xf32>
    tpu.vector_store %arg4[%c0_7, %c0_8], %10 {strides = array<i32>} : memref<256x128xf32, #tpu.memory_space<vmem>>, vector<256x128xf32>,
    return
  }
  func.func @transform_0(%arg0: i32) -> (i32, i32) {
    %c0_i32 = arith.constant 0 : i32
    %c0_i32_0 = arith.constant 0 : i32
    return %arg0, %c0_i32 : i32, i32
  }
  func.func @transform_1(%arg0: i32) -> (i32, i32) {
    %c0_i32 = arith.constant 0 : i32
    %c0_i32_0 = arith.constant 0 : i32
    %c0_i32_1 = arith.constant 0 : i32
    return %c0_i32, %c0_i32_0 : i32, i32
  }
  func.func @transform_2(%arg0: i32) -> (i32, i32) {
    %c0_i32 = arith.constant 0 : i32
    %c0_i32_0 = arith.constant 0 : i32
    %c0_i32_1 = arith.constant 0 : i32
    return %c0_i32, %c0_i32_0 : i32, i32
  }
  func.func @transform_3(%arg0: i32) -> (i32, i32) {
    %c0_i32 = arith.constant 0 : i32
    %c0_i32_0 = arith.constant 0 : i32
    return %arg0, %c0_i32 : i32, i32
  }
}

</mosaic_0001>

<bundles_post_ra>
// kernel: tpu_custom_call.1
= control target key start
LH: loop header
LB: loop body
LE: loop exit
PB: predicated region body
PF: predicated region fallthrough
CT: control target
= control target key end

     0   :  { %8 = vsyncpa [#allocation3], 0  ;;  %s1178_s0 = inlined_call_operand.vmem [shape: bf16[512,96], index: 0, kind: input, shape index: {}]   ;;  %s1179_s1 = inlined_call_operand.vmem [shape: bf16[96,128], index: 1, kind: input, shape index: {}]   ;;  %s1180_s2 = inlined_call_operand.vmem [shape: f32[1,128], index: 2, kind: input, shape index: {}]   ;;  %s1181_s3 = inlined_call_operand.hbm [shape: f32[512,128], index: 3, kind: output, shape index: {}]  }
   0x1   :  { %10 = vsyncpa [#allocation3 + $0x1], 0  ;;  %s966_s12 = smov 0   ;;  %s968_s13 = smov 0  }
   0x2   :  { %s970_s14 = smov 0   ;;  %s972_s15 = smov 0  }
   0x3 LB: > { %s987_s16 = sadd.s32 4294967295, %s942_s15   ;;  %s681_s17 = sadd.s32 4294967294, %s942_s15   ;;  %s942_s15 = sphi %s972_s15, %s1187_s15   ;;  %s938_s14 = sphi %s970_s14, %s1186_s14   ;;  %s934_s13 = sphi %s968_s13, %s1185_s13   ;;  %s930_s12 = sphi %s966_s12, %s1184_s12  }
   0x4   : > { %s991_s18 = sadd.s32 1, %s942_s15   ;;  %s91_s19 = sadd.s32 1, %s938_s14 }
   0x5   : > { %s88_s20 = ssub.s32 %s942_s15, %s991_s18  ;;  %p101_p0 = scmp.ne.s32.totalorder %s938_s14, %s934_s13 }
   0x6   : > { %p89_p1 = scmp.eq.s32.totalorder %s88_s20, 0  ;;  %p102_p2 = scmp.eq.s32.totalorder %s987_s16, 1 }
   0x7   : > { %p107_p3 = scmp.ne.s32.totalorder %s934_s13, %s930_s12  ;;  %p108_p4 = scmp.eq.s32.totalorder %s681_s17, 1 }
   0x8   : > { %s1002_s21 = scalar_select %p89_p1, %s938_s14, %s91_s19  }
   0x9   : > { %p1004_p5 = por %p102_p2, %p101_p0  ;;  %p1008_p6 = por %p108_p4, %p107_p3 }
   0xa   : > { %p684_p7 = scmp.ge.s32.totalorder %s942_s15, 1  ;;  %p141_p8 = scmp.lt.s32.totalorder %s942_s15, 3 }
   0xc   : > { %p142_p9 = pnand %p684_p7, %p141_p8 }
   0xd   : > { %s686_s28 = sshll.u32 (!%p142_p9), %s987_s16, 5  ;;  %s162_s20 = sand.u32 (!%p142_p9), 1, %s934_s13  }
   0xe   : > { %145 = sbr.rel (%p142_p9) target bundleno = 242 (0xf2), region = 32  ;;  %p166_p10 = scmp.lt.s32.totalorder (!%p142_p9), %s686_s28, 63 }
   0xf   : > { %s685_s26 = sshll.u32 (!%p142_p9), %s162_s20, 8  ;;  %s604_s6 = scalar_lea.sflag (!%p142_p9), [#allocation3], %s162_s20 }
  0x10   : > { %s1080_s27 = scalar_lea.vmem (!%p142_p9), [#allocation2], %s685_s26  ;;  %s900_s11 = scalar_lea.hbm (!%p142_p9), %s1181_s3, 512 }
  0x11   : > { %s616_s4 = sshll.u32 (!%p142_p9), %s1080_s27, 4  ;;  %s617_s4 = int_to_ptr.vmem [resolvable:$true] %s616_s4 }
  0x13   : > { %v818_v0 = vld [vmem:[%s1179_s1 + $0x28] sm:$0xff]  ;;  %v817_v1 = vld [vmem:[%s1179_s1 + $0x20] sm:$0xff]  ;;  %v816_v2 = vld [vmem:[%s1179_s1 + $0x18] sm:$0xff]  ;;  %s1189_s28 = smov (!%p166_p10, %s686_s28), 63  ;;  %vm337_vm0 = vcmask 785408  }
  0x14   : > { %388 = vmatpush.bf16.msra.mxu0 %v818_v0  ;;  %820 = vmatpush.bf16.msra.mxu1 %v818_v0  ;;  %v815_v3 = vld [vmem:[%s1179_s1 + $0x10] sm:$0xff]  ;;  %v814_v4 = vld [vmem:[%s1179_s1 + $0x8] sm:$0xff]  ;;  %s687_s8 = sshll.u32 %s1189_s28, 2  ;;  %v813_v5 = vld [vmem:[%s1179_s1] sm:$0xff]  ;;  %s819_s28 = sshll.u32 %s987_s16, 8 }
  0x15   : > { %821 = vmatpush.bf16.msra.mxu2 %v818_v0  ;;  %822 = vmatpush.bf16.msra.mxu3 %v818_v0  ;;  %s1036_s19 = scalar_lea.vmem %s1178_s0, %s687_s8  ;;  %v1074_v22 = vld [vmem:[%s1180_s2] ss:$0 sm:$0xff]  ;;  %s615_s16 = scalar_lea.hbm %s1181_s3, %s819_s28 }
  0x16   : > { %v797_v6 = vld [vmem:[%s1036_s19] sm:$0xff]  ;;  %v798_v10 = vld [vmem:[%s1036_s19 + $0x8] sm:$0xff]  ;;  %v799_v14 = vld [vmem:[%s1036_s19 + $0x10] sm:$0xff]  ;;  %s618_s5 = sshll.u32 %s615_s16, 4  ;;  %s619_s5 = int_to_ptr.hbm [resolvable:$true] %s618_s5 }
  0x17   : > { %v801_v7 = vld [vmem:[%s1036_s19 + $0x20] sm:$0xff]  ;;  %v802_v11 = vld [vmem:[%s1036_s19 + $0x28] sm:$0xff]  ;;  %v803_v15 = vld [vmem:[%s1036_s19 + $0x30] sm:$0xff]  ;;  %s894_s7 = sshra.s32 %s619_s5, 4  ;;  %s895_s7 = int_to_ptr.hbm [resolvable:$true] %s894_s7 }
  0x18   : > { %389 = vmatpush.bf16.msra.mxu0 %v817_v1  ;;  %823 = vmatpush.bf16.msra.mxu1 %v817_v1  ;;  %v805_v8 = vld [vmem:[%s1036_s19 + $0x40] sm:$0xff]  ;;  %v806_v12 = vld [vmem:[%s1036_s19 + $0x48] sm:$0xff]  ;;  %v807_v16 = vld [vmem:[%s1036_s19 + $0x50] sm:$0xff]  ;;  %s896_s8 = scalar_lea.hbm %s895_s7, 256  ;;  %p901_p0 = scmp.lt.s32.totalorder %s895_s7, %s1181_s3 }
  0x19   : > { %824 = vmatpush.bf16.msra.mxu2 %v817_v1  ;;  %825 = vmatpush.bf16.msra.mxu3 %v817_v1  ;;  %v809_v9 = vld [vmem:[%s1036_s19 + $0x60] sm:$0xff]  ;;  %v810_v13 = vld [vmem:[%s1036_s19 + $0x68] sm:$0xff]  ;;  %v811_v17 = vld [vmem:[%s1036_s19 + $0x70] sm:$0xff]  ;;  %p897_p11 = scmp.ne.s32.totalorder %s895_s7, %s896_s8  ;;  %p902_p1 = scmp.lt.s32.totalorder %s900_s11, %s896_s8 }
  0x1a   : > { %v800_v18 = vld [vmem:[%s1036_s19 + $0x18] sm:$0xff] }
  0x1b   : > { %v804_v19 = vld [vmem:[%s1036_s19 + $0x38] sm:$0xff]  ;;  %p898_p12 = pnand %p897_p11, %p1004_p5  ;;  %p903_p2 = por %p902_p1, %p901_p0 }
  0x1c   : > { %390 = vmatpush.bf16.msra.mxu0 %v816_v2  ;;  %826 = vmatpush.bf16.msra.mxu1 %v816_v2  ;;  %v808_v20 = vld [vmem:[%s1036_s19 + $0x58] sm:$0xff] }
  0x1d   : > { %827 = vmatpush.bf16.msra.mxu2 %v816_v2  ;;  %828 = vmatpush.bf16.msra.mxu3 %v816_v2  ;;  %v812_v21 = vld [vmem:[%s1036_s19 + $0x78] sm:$0xff]  ;;  %p899_p13 = pneg %p898_p12 }
  0x1f   : > { %p904_p3 = pnand %p903_p2, %p899_p13 }
  0x20   : > { %391 = vmatpush.bf16.msra.mxu0 %v815_v3  ;;  %829 = vmatpush.bf16.msra.mxu1 %v815_v3 }
  0x21   : > { %830 = vmatpush.bf16.msra.mxu2 %v815_v3  ;;  %831 = vmatpush.bf16.msra.mxu3 %v815_v3 }
  0x24   : > { %392 = vmatpush.bf16.msra.mxu0 %v814_v4  ;;  %832 = vmatpush.bf16.msra.mxu1 %v814_v4 }
  0x25   : > { %833 = vmatpush.bf16.msra.mxu2 %v814_v4  ;;  %834 = vmatpush.bf16.msra.mxu3 %v814_v4 }
  0x28   : > { %393 = vmatpush.bf16.msra.mxu0 %v813_v5  ;;  %835 = vmatpush.bf16.msra.mxu1 %v813_v5 }
  0x29   : > { %836 = vmatpush.bf16.msra.mxu2 %v813_v5  ;;  %837 = vmatpush.bf16.msra.mxu3 %v813_v5 }
  0x2b   : > { %776 = vmatmul.msk.bf16.vlgmr.msra.gmra.mxu0 %vm337_vm0, %v797_v6  ;;  %780 = vmatmul.msk.bf16.vlgmr.msra.gmra.mxu1 %vm337_vm0, %v801_v7 }
  0x2c   : > { %784 = vmatmul.msk.bf16.vlgmr.msra.gmra.mxu2 %vm337_vm0, %v805_v8  ;;  %788 = vmatmul.msk.bf16.vlgmr.msra.gmra.mxu3 %vm337_vm0, %v809_v9 }
  0x3b   : > { %777 = vmatmul.msk.bf16.gmra.mxu0 %vm337_vm0, %v798_v10  ;;  %781 = vmatmul.msk.bf16.gmra.mxu1 %vm337_vm0, %v802_v11 }
  0x3c   : > { %785 = vmatmul.msk.bf16.gmra.mxu2 %vm337_vm0, %v806_v12  ;;  %789 = vmatmul.msk.bf16.gmra.mxu3 %vm337_vm0, %v810_v13 }
  0x4b   : > { %778 = vmatmul.msk.bf16.gmra.mxu0 %vm337_vm0, %v799_v14  ;;  %782 = vmatmul.msk.bf16.gmra.mxu1 %vm337_vm0, %v803_v15 }
  0x4c   : > { %786 = vmatmul.msk.bf16.gmra.mxu2 %vm337_vm0, %v807_v16  ;;  %790 = vmatmul.msk.bf16.gmra.mxu3 %vm337_vm0, %v811_v17 }
  0x5b   : > { %779 = vmatmul.msk.bf16.gmra.mxu0 %vm337_vm0, %v800_v18  ;;  %783 = vmatmul.msk.bf16.gmra.mxu1 %vm337_vm0, %v804_v19 }
  0x5c   : > { %787 = vmatmul.msk.bf16.gmra.mxu2 %vm337_vm0, %v808_v20  ;;  %791 = vmatmul.msk.bf16.gmra.mxu3 %vm337_vm0, %v812_v21 }
  0xa8   : > { %v395_v23 = vpop.f32.mrf.mxu0  ;;  %v415_v24 = vpop.f32.mrf.mxu1 }
  0xa9   : > { %v396_v25 = vadd.f32 %v1074_v22, %v395_v23  ;;  %v416_v26 = vadd.f32 %v1074_v22, %v415_v24 }
  0xab   : > { %vm475_vm1 = vcmp.ge.f32.partialorder %v396_v25, 0.0  ;;  %v507_v27 = vmul.f32 0.2, %v396_v25  ;;  %vm483_vm2 = vcmp.ge.f32.partialorder %v416_v26, 0.0  ;;  %v515_v28 = vmul.f32 0.2, %v416_v26 }
  0xad   : > { %v539_v29 = vsel %vm475_vm1, %v396_v25, %v507_v27  ;;  %v547_v30 = vsel %vm483_vm2, %v416_v26, %v515_v28 }
  0xae   : > { %571 = vst [vmem:[%s1080_s27] sm:$0xff] %v539_v29 }
  0xaf   : > { %579 = vst [vmem:[%s1080_s27 + $0x40] sm:$0xff] %v547_v30  ;;  %v435_v31 = vpop.f32.mrf.mxu2  ;;  %v455_v32 = vpop.f32.mrf.mxu3 }
  0xb0   : > { %v436_v33 = vadd.f32 %v1074_v22, %v435_v31  ;;  %v456_v34 = vadd.f32 %v1074_v22, %v455_v32  ;;  %v397_v35 = vpop.f32.mrf.mxu0  ;;  %v417_v36 = vpop.f32.mrf.mxu1 }
  0xb1   : > { %v398_v37 = vadd.f32 %v1074_v22, %v397_v35  ;;  %v418_v38 = vadd.f32 %v1074_v22, %v417_v36 }
  0xb2   : > { %vm491_vm3 = vcmp.ge.f32.partialorder %v436_v33, 0.0  ;;  %v523_v39 = vmul.f32 0.2, %v436_v33  ;;  %vm499_vm4 = vcmp.ge.f32.partialorder %v456_v34, 0.0  ;;  %v531_v40 = vmul.f32 0.2, %v456_v34 }
  0xb3   : > { %vm476_vm5 = vcmp.ge.f32.partialorder %v398_v37, 0.0  ;;  %v508_v41 = vmul.f32 0.2, %v398_v37  ;;  %vm484_vm6 = vcmp.ge.f32.partialorder %v418_v38, 0.0  ;;  %v516_v42 = vmul.f32 0.2, %v418_v38 }
  0xb4   : > { %v555_v43 = vsel %vm491_vm3, %v436_v33, %v523_v39  ;;  %v563_v44 = vsel %vm499_vm4, %v456_v34, %v531_v40 }
  0xb5   : > { %587 = vst [vmem:[%s1080_s27 + $0x80] sm:$0xff] %v555_v43  ;;  %v540_v45 = vsel %vm476_vm5, %v398_v37, %v508_v41  ;;  %v548_v46 = vsel %vm484_vm6, %v418_v38, %v516_v42 }
  0xb6   : > { %595 = vst [vmem:[%s1080_s27 + $0xc0] sm:$0xff] %v563_v44 }
  0xb7   : > { %572 = vst [vmem:[%s1080_s27 + $0x8] sm:$0xff] %v540_v45  ;;  %v437_v47 = vpop.f32.mrf.mxu2  ;;  %v457_v48 = vpop.f32.mrf.mxu3 }
  0xb8   : > { %580 = vst [vmem:[%s1080_s27 + $0x48] sm:$0xff] %v548_v46  ;;  %v438_v49 = vadd.f32 %v1074_v22, %v437_v47  ;;  %v458_v50 = vadd.f32 %v1074_v22, %v457_v48  ;;  %v400_v51 = vpop.f32.mrf.mxu0  ;;  %v420_v52 = vpop.f32.mrf.mxu1 }
  0xb9   : > { %v401_v53 = vadd.f32 %v1074_v22, %v400_v51  ;;  %v421_v54 = vadd.f32 %v1074_v22, %v420_v52 }
  0xba   : > { %vm492_vm7 = vcmp.ge.f32.partialorder %v438_v49, 0.0  ;;  %v524_v55 = vmul.f32 0.2, %v438_v49  ;;  %vm500_vm8 = vcmp.ge.f32.partialorder %v458_v50, 0.0  ;;  %v532_v56 = vmul.f32 0.2, %v458_v50 }
  0xbb   : > { %vm477_vm9 = vcmp.ge.f32.partialorder %v401_v53, 0.0  ;;  %v509_v57 = vmul.f32 0.2, %v401_v53  ;;  %vm485_vm10 = vcmp.ge.f32.partialorder %v421_v54, 0.0  ;;  %v517_v58 = vmul.f32 0.2, %v421_v54 }
  0xbc   : > { %v556_v59 = vsel %vm492_vm7, %v438_v49, %v524_v55  ;;  %v564_v60 = vsel %vm500_vm8, %v458_v50, %v532_v56 }
  0xbd   : > { %588 = vst [vmem:[%s1080_s27 + $0x88] sm:$0xff] %v556_v59  ;;  %v541_v61 = vsel %vm477_vm9, %v401_v53, %v509_v57  ;;  %v549_v62 = vsel %vm485_vm10, %v421_v54, %v517_v58 }
  0xbe   : > { %596 = vst [vmem:[%s1080_s27 + $0xc8] sm:$0xff] %v564_v60 }
  0xbf   : > { %573 = vst [vmem:[%s1080_s27 + $0x10] sm:$0xff] %v541_v61  ;;  %v440_v63 = vpop.f32.mrf.mxu2  ;;  %v460_v0 = vpop.f32.mrf.mxu3 }
  0xc0   : > { %581 = vst [vmem:[%s1080_s27 + $0x50] sm:$0xff] %v549_v62  ;;  %v441_v1 = vadd.f32 %v1074_v22, %v440_v63  ;;  %v461_v2 = vadd.f32 %v1074_v22, %v460_v0  ;;  %v402_v3 = vpop.f32.mrf.mxu0  ;;  %v422_v4 = vpop.f32.mrf.mxu1 }
  0xc1   : > { %v403_v5 = vadd.f32 %v1074_v22, %v402_v3  ;;  %v423_v6 = vadd.f32 %v1074_v22, %v422_v4 }
  0xc2   : > { %vm493_vm11 = vcmp.ge.f32.partialorder %v441_v1, 0.0  ;;  %v525_v7 = vmul.f32 0.2, %v441_v1  ;;  %vm501_vm12 = vcmp.ge.f32.partialorder %v461_v2, 0.0  ;;  %v533_v8 = vmul.f32 0.2, %v461_v2 }
  0xc3   : > { %vm478_vm13 = vcmp.ge.f32.partialorder %v403_v5, 0.0  ;;  %v510_v9 = vmul.f32 0.2, %v403_v5  ;;  %vm486_vm14 = vcmp.ge.f32.partialorder %v423_v6, 0.0  ;;  %v518_v10 = vmul.f32 0.2, %v423_v6 }
  0xc4   : > { %v557_v11 = vsel %vm493_vm11, %v441_v1, %v525_v7  ;;  %v565_v12 = vsel %vm501_vm12, %v461_v2, %v533_v8 }
  0xc5   : > { %589 = vst [vmem:[%s1080_s27 + $0x90] sm:$0xff] %v557_v11  ;;  %v542_v13 = vsel %vm478_vm13, %v403_v5, %v510_v9  ;;  %v550_v14 = vsel %vm486_vm14, %v423_v6, %v518_v10 }
  0xc6   : > { %597 = vst [vmem:[%s1080_s27 + $0xd0] sm:$0xff] %v565_v12 }
  0xc7   : > { %574 = vst [vmem:[%s1080_s27 + $0x18] sm:$0xff] %v542_v13  ;;  %v442_v15 = vpop.f32.mrf.mxu2  ;;  %v462_v16 = vpop.f32.mrf.mxu3 }
  0xc8   : > { %582 = vst [vmem:[%s1080_s27 + $0x58] sm:$0xff] %v550_v14  ;;  %v443_v17 = vadd.f32 %v1074_v22, %v442_v15  ;;  %v463_v18 = vadd.f32 %v1074_v22, %v462_v16  ;;  %v405_v19 = vpop.f32.mrf.mxu0  ;;  %v425_v20 = vpop.f32.mrf.mxu1 }
  0xc9   : > { %v406_v21 = vadd.f32 %v1074_v22, %v405_v19  ;;  %v426_v23 = vadd.f32 %v1074_v22, %v425_v20 }
  0xca   : > { %vm494_vm15 = vcmp.ge.f32.partialorder %v443_v17, 0.0  ;;  %v526_v24 = vmul.f32 0.2, %v443_v17  ;;  %vm502_vm0 = vcmp.ge.f32.partialorder %v463_v18, 0.0  ;;  %v534_v25 = vmul.f32 0.2, %v463_v18 }
  0xcb   : > { %vm479_vm1 = vcmp.ge.f32.partialorder %v406_v21, 0.0  ;;  %v511_v26 = vmul.f32 0.2, %v406_v21  ;;  %vm487_vm2 = vcmp.ge.f32.partialorder %v426_v23, 0.0  ;;  %v519_v27 = vmul.f32 0.2, %v426_v23 }
  0xcc   : > { %v558_v28 = vsel %vm494_vm15, %v443_v17, %v526_v24  ;;  %v566_v29 = vsel %vm502_vm0, %v463_v18, %v534_v25 }
  0xcd   : > { %590 = vst [vmem:[%s1080_s27 + $0x98] sm:$0xff] %v558_v28  ;;  %v543_v30 = vsel %vm479_vm1, %v406_v21, %v511_v26  ;;  %v551_v31 = vsel %vm487_vm2, %v426_v23, %v519_v27 }
  0xce   : > { %598 = vst [vmem:[%s1080_s27 + $0xd8] sm:$0xff] %v566_v29 }
  0xcf   : > { %575 = vst [vmem:[%s1080_s27 + $0x20] sm:$0xff] %v543_v30  ;;  %v445_v32 = vpop.f32.mrf.mxu2  ;;  %v465_v33 = vpop.f32.mrf.mxu3 }
  0xd0   : > { %583 = vst [vmem:[%s1080_s27 + $0x60] sm:$0xff] %v551_v31  ;;  %v446_v34 = vadd.f32 %v1074_v22, %v445_v32  ;;  %v466_v35 = vadd.f32 %v1074_v22, %v465_v33  ;;  %v407_v36 = vpop.f32.mrf.mxu0  ;;  %v427_v37 = vpop.f32.mrf.mxu1 }
  0xd1   : > { %v408_v38 = vadd.f32 %v1074_v22, %v407_v36  ;;  %v428_v39 = vadd.f32 %v1074_v22, %v427_v37 }
  0xd2   : > { %vm495_vm3 = vcmp.ge.f32.partialorder %v446_v34, 0.0  ;;  %v527_v40 = vmul.f32 0.2, %v446_v34  ;;  %vm503_vm4 = vcmp.ge.f32.partialorder %v466_v35, 0.0  ;;  %v535_v41 = vmul.f32 0.2, %v466_v35 }
  0xd3   : > { %vm480_vm5 = vcmp.ge.f32.partialorder %v408_v38, 0.0  ;;  %v512_v42 = vmul.f32 0.2, %v408_v38  ;;  %vm488_vm6 = vcmp.ge.f32.partialorder %v428_v39, 0.0  ;;  %v520_v43 = vmul.f32 0.2, %v428_v39 }
  0xd4   : > { %v559_v44 = vsel %vm495_vm3, %v446_v34, %v527_v40  ;;  %v567_v45 = vsel %vm503_vm4, %v466_v35, %v535_v41 }
  0xd5   : > { %591 = vst [vmem:[%s1080_s27 + $0xa0] sm:$0xff] %v559_v44  ;;  %v544_v46 = vsel %vm480_vm5, %v408_v38, %v512_v42  ;;  %v552_v47 = vsel %vm488_vm6, %v428_v39, %v520_v43 }
  0xd6   : > { %599 = vst [vmem:[%s1080_s27 + $0xe0] sm:$0xff] %v567_v45 }
  0xd7   : > { %576 = vst [vmem:[%s1080_s27 + $0x28] sm:$0xff] %v544_v46  ;;  %v447_v48 = vpop.f32.mrf.mxu2  ;;  %v467_v49 = vpop.f32.mrf.mxu3 }
  0xd8   : > { %584 = vst [vmem:[%s1080_s27 + $0x68] sm:$0xff] %v552_v47  ;;  %v448_v50 = vadd.f32 %v1074_v22, %v447_v48  ;;  %v468_v51 = vadd.f32 %v1074_v22, %v467_v49  ;;  %v410_v52 = vpop.f32.mrf.mxu0  ;;  %v430_v53 = vpop.f32.mrf.mxu1 }
  0xd9   : > { %v411_v54 = vadd.f32 %v1074_v22, %v410_v52  ;;  %v431_v55 = vadd.f32 %v1074_v22, %v430_v53 }
  0xda   : > { %vm496_vm7 = vcmp.ge.f32.partialorder %v448_v50, 0.0  ;;  %v528_v56 = vmul.f32 0.2, %v448_v50  ;;  %vm504_vm8 = vcmp.ge.f32.partialorder %v468_v51, 0.0  ;;  %v536_v57 = vmul.f32 0.2, %v468_v51 }
  0xdb   : > { %vm481_vm9 = vcmp.ge.f32.partialorder %v411_v54, 0.0  ;;  %v513_v58 = vmul.f32 0.2, %v411_v54  ;;  %vm489_vm10 = vcmp.ge.f32.partialorder %v431_v55, 0.0  ;;  %v521_v59 = vmul.f32 0.2, %v431_v55 }
  0xdc   : > { %v560_v60 = vsel %vm496_vm7, %v448_v50, %v528_v56  ;;  %v568_v61 = vsel %vm504_vm8, %v468_v51, %v536_v57 }
  0xdd   : > { %592 = vst [vmem:[%s1080_s27 + $0xa8] sm:$0xff] %v560_v60  ;;  %v545_v62 = vsel %vm481_vm9, %v411_v54, %v513_v58  ;;  %v553_v63 = vsel %vm489_vm10, %v431_v55, %v521_v59 }
  0xde   : > { %600 = vst [vmem:[%s1080_s27 + $0xe8] sm:$0xff] %v568_v61 }
  0xdf   : > { %577 = vst [vmem:[%s1080_s27 + $0x30] sm:$0xff] %v545_v62  ;;  %v450_v0 = vpop.f32.mrf.mxu2  ;;  %v470_v1 = vpop.f32.mrf.mxu3 }
  0xe0   : > { %585 = vst [vmem:[%s1080_s27 + $0x70] sm:$0xff] %v553_v63  ;;  %v451_v2 = vadd.f32 %v1074_v22, %v450_v0  ;;  %v471_v3 = vadd.f32 %v1074_v22, %v470_v1  ;;  %v412_v4 = vpop.f32.mrf.mxu0  ;;  %v432_v5 = vpop.f32.mrf.mxu1 }
  0xe1   : > { %v413_v6 = vadd.f32 %v1074_v22, %v412_v4  ;;  %v433_v7 = vadd.f32 %v1074_v22, %v432_v5 }
  0xe2   : > { %vm497_vm11 = vcmp.ge.f32.partialorder %v451_v2, 0.0  ;;  %v529_v8 = vmul.f32 0.2, %v451_v2  ;;  %vm505_vm12 = vcmp.ge.f32.partialorder %v471_v3, 0.0  ;;  %v537_v9 = vmul.f32 0.2, %v471_v3 }
  0xe3   : > { %vm482_vm13 = vcmp.ge.f32.partialorder %v413_v6, 0.0  ;;  %v514_v10 = vmul.f32 0.2, %v413_v6  ;;  %vm490_vm14 = vcmp.ge.f32.partialorder %v433_v7, 0.0  ;;  %v522_v11 = vmul.f32 0.2, %v433_v7 }
  0xe4   : > { %v561_v12 = vsel %vm497_vm11, %v451_v2, %v529_v8  ;;  %v569_v13 = vsel %vm505_vm12, %v471_v3, %v537_v9 }
  0xe5   : > { %593 = vst [vmem:[%s1080_s27 + $0xb0] sm:$0xff] %v561_v12  ;;  %v546_v14 = vsel %vm482_vm13, %v413_v6, %v514_v10  ;;  %v554_v15 = vsel %vm490_vm14, %v433_v7, %v522_v11 }
  0xe6   : > { %601 = vst [vmem:[%s1080_s27 + $0xf0] sm:$0xff] %v569_v13 }
  0xe7   : > { %578 = vst [vmem:[%s1080_s27 + $0x38] sm:$0xff] %v546_v14  ;;  %v452_v16 = vpop.f32.mrf.mxu2  ;;  %v472_v17 = vpop.f32.mrf.mxu3 }
  0xe8   : > { %586 = vst [vmem:[%s1080_s27 + $0x78] sm:$0xff] %v554_v15  ;;  %v453_v18 = vadd.f32 %v1074_v22, %v452_v16  ;;  %v473_v19 = vadd.f32 %v1074_v22, %v472_v17 }
  0xea   : > { %vm498_vm15 = vcmp.ge.f32.partialorder %v453_v18, 0.0  ;;  %v530_v20 = vmul.f32 0.2, %v453_v18  ;;  %vm506_vm0 = vcmp.ge.f32.partialorder %v473_v19, 0.0  ;;  %v538_v21 = vmul.f32 0.2, %v473_v19 }
  0xec   : > { %v562_v23 = vsel %vm498_vm15, %v453_v18, %v530_v20  ;;  %v570_v24 = vsel %vm506_vm0, %v473_v19, %v538_v21 }
  0xed   : > { %594 = vst [vmem:[%s1080_s27 + $0xb8] sm:$0xff] %v562_v23 }
  0xee   : > { %602 = vst [vmem:[%s1080_s27 + $0xf8] sm:$0xff] %v570_v24 }
  0xef   : > { %907 = shalt.err (!%p904_p3)
}
  0xf0   : > { %s944_s20 = smov 128   ;;  %s945_s24 = smov 8  }
  0xf1   : > { %838 = dma.vmem_to_hbm [thread:$0]  (%p1004_p5), %s617_s4, 4096, %s619_s5, %s604_s6, %s944_s20, %s944_s20, %s945_s24  }
  0xf2 PF: > { %p844_p4 = scmp.ge.s32.totalorder %s942_s15, 2  ;;  %s633_s25 = sand.u32 1, %s930_s12  }
  0xf3   : > { %s634_s26 = scalar_lea.sflag [#allocation3], %s633_s25 }
  0xf4   : > { %p841_p7 = pnand %p844_p4, %p1008_p6 }
  0xf6   : > { %p842_p8 = pneg %p841_p7 }
  0xf8   : > { %925 = dma.done.wait (%p842_p8), %s634_s26, 4096  }
  0xf9   : > { %927 = vsyncadd (%p842_p8), %s634_s26, 4294963200  ;;  %p13_p9 = scmp.ge.s32.totalorder %s991_s18, 4   ;;  %s1184_s12 = smov %s934_s13 }
  0xfa   : > { %s1185_s13 = smov %s938_s14  ;;  %s1186_s14 = smov %s1002_s21 }
  0xfb   : > { %s1187_s15 = smov %s991_s18  ;;  %15 = sbr.rel (!%p13_p9) target bundleno = 3 (0x3), region = 67 }
 0x100   :  { %640 = vsyncpa [#allocation3], 1 }
 0x101   :  { %642 = vsyncpa [#allocation3 + $0x1], 1 }

</bundles_post_ra>
